<compile_context>
chip_gen: v6e
topology: v6e:2x2x1
jax: 0.10.0
libtpu: 0.0.40
codegen_flags: <defaults>
</compile_context>

<pallas_src>
import jax
import jax.numpy as jnp
import numpy as np
from jax.experimental import pallas as pl
from jax.experimental.pallas import tpu as pltpu

# ----------------------------- config ---------------------------------------
FOCAL_ALPHA = 0.25
FOCAL_GAMMA = 2.0          # pow(x, 2.0) implemented exactly as x*x in-kernel
C_POS_W = 1.0
C_NEG_W = 1.0
COARSE_WEIGHT = 1.0
FINE_WEIGHT = 1.0
FINE_CORRECT_THR = 1.0
EPS = 1e-6

_VMEM_LIMIT_BYTES = 40 * 1024 * 1024      # < v7x 64 MiB physical, < v5e/v6e 128 MiB
_TILE_INPUT_BUDGET = 24 * 1024 * 1024     # double-buffered conf+gt row tiles


def _choose_tile_r(HW0, HW1, elem_bytes):
    """Row-tile height: largest multiple of 8 whose double-buffered conf+gt tiles fit
    the byte budget; prefers an exact divisor of HW0 near the cap (avoids ragged tail)."""
    bytes_per_row = HW1 * elem_bytes * 2            # x2 for pipeline double-buffering
    cap = _TILE_INPUT_BUDGET // max(bytes_per_row, 1)
    if cap >= HW0:
        return HW0                                  # one tile: block == full dim (always legal)
    cap = max(8, (cap // 8) * 8)
    t = cap
    while t >= max(8, (cap * 3) // 4):              # look for an exact divisor near the cap
        if HW0 % t == 0:
            return t
        t -= 8
    return cap                                      # ragged last tile; kernel masks overhang


# ----------------------- coarse (focal) loss kernel -------------------------
def _make_coarse_kernel(HW0, tile_r, ragged):
    def kernel(conf_ref, gt_ref, m0_ref, m1_ref, out_ref):
        """Per row-tile partials: out (tile_r, 4) =
        [row pos-loss*m0, row neg-loss*m0, row cnt_pos, row cnt_neg]."""
        conf = jnp.clip(conf_ref[...].astype(jnp.float32), EPS, 1.0 - EPS)  # (TR, HW1)
        gt = gt_ref[...]
        pos_b = gt == 1
        neg_b = gt == 0
        pos_f = pos_b.astype(jnp.float32)
        neg_f = neg_b.astype(jnp.float32)

        # Single-log focal: t = conf on positives, 1-conf on negatives (gamma == 2.0).
        t = jnp.where(pos_b, conf, 1.0 - conf)
        one_m_t = 1.0 - t
        loss = (-FOCAL_ALPHA) * one_m_t * one_m_t * jnp.log(t)

        # compute_c_weight fused without a (TR, HW1) outer product:
        # lane-wise mask1 first, lane-reduce, then row-wise mask0 on (TR,1) partials.
        m1 = m1_ref[...].astype(jnp.float32)                      # (1, HW1)
        lm = loss * m1                                            # (TR, HW1)

        row_pos = jnp.sum(lm * pos_f, axis=-1, keepdims=True)     # (TR, 1)
        row_neg = jnp.sum(lm * neg_f, axis=-1, keepdims=True)
        cnt_pos = jnp.sum(pos_f, axis=-1, keepdims=True)          # unweighted counts
        cnt_neg = jnp.sum(neg_f, axis=-1, keepdims=True)

        m0 = m0_ref[...].astype(jnp.float32)                      # (TR, 1)
        row_pos = row_pos * m0
        row_neg = row_neg * m0

        if ragged:
            # last row tile overhangs HW0: padded reads are undefined -> mask row partials
            r = pl.program_id(1)
            rows = jax.lax.broadcasted_iota(jnp.int32, (tile_r, 1), 0)
            valid = (r * tile_r + rows) < HW0                     # (TR, 1) bool
            row_pos = jnp.where(valid, row_pos, 0.0)
            row_neg = jnp.where(valid, row_neg, 0.0)
            cnt_pos = jnp.where(valid, cnt_pos, 0.0)
            cnt_neg = jnp.where(valid, cnt_neg, 0.0)

        out_ref[:, 0:1] = row_pos
        out_ref[:, 1:2] = row_neg
        out_ref[:, 2:3] = cnt_pos
        out_ref[:, 3:4] = cnt_neg

    return kernel


def _coarse_loss_sums(conf, conf_gt, mask0, mask1):
    """Returns (4,) global sums: [sum_pos_loss, sum_neg_loss, cnt_pos, cnt_neg]."""
    N, HW0, HW1 = conf.shape
    elem_bytes = conf.dtype.itemsize + conf_gt.dtype.itemsize
    tile_r = _choose_tile_r(HW0, HW1, elem_bytes)
    num_r = pl.cdiv(HW0, tile_r)
    ragged = (HW0 % tile_r) != 0
    HW0_pad = num_r * tile_r

    # tiny reshapes only; big tensors are streamed in their native dtype (no wrapper pass)
    m0 = mask0.reshape(N, HW0, 1)
    m1 = mask1.reshape(N, 1, HW1)

    partials = pl.pallas_call(
        _make_coarse_kernel(HW0, tile_r, ragged),
        out_shape=jax.ShapeDtypeStruct((N, HW0_pad, 4), jnp.float32),
        grid=(N, num_r),
        in_specs=[
            pl.BlockSpec((None, tile_r, HW1), lambda n, r: (n, r, 0)),   # conf (native dtype)
            pl.BlockSpec((None, tile_r, HW1), lambda n, r: (n, r, 0)),   # conf_gt (native dtype)
            pl.BlockSpec((None, tile_r, 1), lambda n, r: (n, r, 0)),     # mask0 rows
            pl.BlockSpec((None, 1, HW1), lambda n, r: (n, 0, 0)),        # mask1 cols
        ],
        out_specs=pl.BlockSpec((None, tile_r, 4), lambda n, r: (n, r, 0)),
        compiler_params=pltpu.CompilerParams(
            dimension_semantics=("parallel", "parallel"),   # v7x: shard across both TCs
            vmem_limit_bytes=_VMEM_LIMIT_BYTES,
        ),
    )(conf, conf_gt, m0, m1)

    return jnp.sum(partials, axis=(0, 1))        # (4,)


# ----------------------- fine (l2_with_std) loss kernel ----------------------
def _fine_kernel(ef_ref, eg_ref, out_ref):
    """ef_ref: (3, M) <x; y; std>, eg_ref: (2, M) <x; y>.
    Outputs [sum(offset_l2 * weight * correct), count(correct)] to SMEM."""
    ef = ef_ref[...]
    eg = eg_ref[...]
    fx, fy, fstd = ef[0:1, :], ef[1:2, :], ef[2:3, :]          # (1, M) each
    gx, gy = eg[0:1, :], eg[1:2, :]

    inv_std = 1.0 / jnp.maximum(fstd, 1e-10)
    weight = inv_std / jnp.mean(inv_std)

    correct = jnp.maximum(jnp.abs(gx), jnp.abs(gy)) < FINE_CORRECT_THR
    has_correct = jnp.sum(correct.astype(jnp.float32)) > 0.0

    # training-mode fallback: force index 0 correct with zero weight
    # TODO(synk): eval-mode returns None (fine loss skipped); only training branch implemented.
    idx0 = jax.lax.broadcasted_iota(jnp.int32, correct.shape, 1) == 0
    force = jnp.logical_and(jnp.logical_not(has_correct), idx0)
    correct = jnp.logical_or(correct, force)
    weight = jnp.where(force, 0.0, weight)

    cm = correct.astype(jnp.float32)
    dx = gx - fx
    dy = gy - fy
    out_ref[0] = jnp.sum((dx * dx + dy * dy) * weight * cm)
    out_ref[1] = jnp.sum(cm)


def _fine_loss_sums(expec_f, expec_f_gt):
    ef_t = expec_f.astype(jnp.float32).T       # (3, M), M on the lane axis
    eg_t = expec_f_gt.astype(jnp.float32).T    # (2, M)
    return pl.pallas_call(
        _fine_kernel,
        out_shape=jax.ShapeDtypeStruct((2,), jnp.float32),
        in_specs=[pl.BlockSpec(memory_space=pltpu.MemorySpace.VMEM)] * 2,
        out_specs=pl.BlockSpec(memory_space=pltpu.MemorySpace.SMEM),
    )(ef_t, eg_t)


# ------------------------------ forward --------------------------------------
@jax.jit
def loftr_loss_forward(conf, conf_gt, mask0, mask1, expec_f, expec_f_gt):
    sums = _coarse_loss_sums(conf, conf_gt, mask0, mask1)
    sum_pos, sum_neg = sums[0], sums[1]
    cnt_pos, cnt_neg = sums[2], sums[3]

    # --- edge-case handling (no positives / no negatives), same semantics as the
    # in-place pos_mask[0,0,0] / neg_mask[0,0,0] / weight[0,0,0] mutations in PyTorch ---
    has_pos = cnt_pos > 0.0
    has_neg = cnt_neg > 0.0
    conf000 = jnp.clip(conf[0, 0, 0].astype(jnp.float32), EPS, 1.0 - EPS)
    w000 = mask0[0, 0].astype(jnp.float32) * mask1[0, 0].astype(jnp.float32)
    lp000 = -FOCAL_ALPHA * (1.0 - conf000) ** 2 * jnp.log(conf000)
    ln000 = -FOCAL_ALPHA * conf000 ** 2 * jnp.log(1.0 - conf000)

    c_pos_w = jnp.where(has_pos, C_POS_W, 0.0)
    c_neg_w = jnp.where(has_neg, C_NEG_W, 0.0)
    # no positives: [0,0,0] (a negative) gets weight 0 -> remove its neg contribution
    sum_neg = jnp.where(has_pos, sum_neg, sum_neg - ln000 * w000)
    cnt_pos = jnp.where(has_pos, cnt_pos, 1.0)
    # no negatives: [0,0,0] (a positive) gets weight 0 -> remove its pos contribution
    sum_pos = jnp.where(has_neg, sum_pos, sum_pos - lp000 * w000)
    cnt_neg = jnp.where(has_neg, cnt_neg, 1.0)

    loss_c = c_pos_w * (sum_pos / cnt_pos) + c_neg_w * (sum_neg / cnt_neg)

    fsums = _fine_loss_sums(expec_f, expec_f_gt)
    loss_f = fsums[0] / fsums[1]

    loss = loss_c * COARSE_WEIGHT + loss_f * FINE_WEIGHT
    return loss, loss_c, loss_f


# ---------------------------- pure-JAX reference ------------------------------
def _reference(conf, conf_gt, mask0, mask1, expec_f, expec_f_gt):
    w = mask0[:, :, None] * mask1[:, None, :]
    pos = (conf_gt == 1.0).astype(jnp.float32)
    neg = (conf_gt == 0.0).astype(jnp.float32)
    c = jnp.clip(conf, EPS, 1.0 - EPS)
    lp = -FOCAL_ALPHA * (1.0 - c) ** 2 * jnp.log(c)
    ln = -FOCAL_ALPHA * c ** 2 * jnp.log(1.0 - c)
    loss_c = C_POS_W * (jnp.sum(lp * w * pos) / jnp.sum(pos)) + \
             C_NEG_W * (jnp.sum(ln * w * neg) / jnp.sum(neg))

    correct = jnp.max(jnp.abs(expec_f_gt), axis=1) < FINE_CORRECT_THR
    inv = 1.0 / jnp.maximum(expec_f[:, 2], 1e-10)
    wt = inv / jnp.mean(inv)
    off = jnp.sum((expec_f_gt - expec_f[:, :2]) ** 2, -1)
    loss_f = jnp.sum(off * wt * correct) / jnp.sum(correct)
    return loss_c * COARSE_WEIGHT + loss_f * FINE_WEIGHT


# --------------------------------- main ---------------------------------------
if __name__ == "__main__":
    key = jax.random.PRNGKey(0)
    k1, k2, k3, k4, k5, k6, k7 = jax.random.split(key, 7)

    N, HW0, HW1, M = 2, 64, 64, 64

    conf = jax.nn.sigmoid(jax.random.normal(k1, (N, HW0, HW1), jnp.float32))
    conf_gt = (jax.random.uniform(k2, (N, HW0, HW1)) < 0.05).astype(jnp.float32)
    mask0 = (jax.random.uniform(k3, (N, HW0)) < 0.9).astype(jnp.float32)
    mask1 = (jax.random.uniform(k4, (N, HW1)) < 0.9).astype(jnp.float32)

    expec_f = jnp.concatenate(
        [0.3 * jax.random.normal(k5, (M, 2), jnp.float32),
         jnp.abs(jax.random.normal(k6, (M, 1), jnp.float32)) + 0.1],
        axis=1)
    expec_f_gt = 0.8 * jax.random.normal(k7, (M, 2), jnp.float32)

    loss, loss_c, loss_f = loftr_loss_forward(
        conf, conf_gt, mask0, mask1, expec_f, expec_f_gt)
    loss = jax.block_until_ready(loss)

    ref = np.asarray(_reference(conf, conf_gt, mask0, mask1, expec_f, expec_f_gt))
    got = np.asarray(loss)
    assert np.allclose(got, ref, rtol=1e-3, atol=1e-5), (got, ref)

    print("KERNEL_OK")
</pallas_src>

<mosaic_0001>
module attributes {stable_mosaic.version = 11 : i64} {
  func.func @kernel(%arg0: i32, %arg1: i32, %arg2: memref<1x64x64xf32, #tpu.memory_space<vmem>>, %arg3: memref<1x64x64xf32, #tpu.memory_space<vmem>>, %arg4: memref<1x64x1xf32, #tpu.memory_space<vmem>>, %arg5: memref<1x1x64xf32, #tpu.memory_space<vmem>>, %arg6: memref<1x64x4xf32, #tpu.memory_space<vmem>>) attributes {dimension_semantics = [#tpu.dimension_semantics<parallel>, #tpu.dimension_semantics<parallel>], iteration_bounds = array<i64: 2, 1>, scalar_prefetch = 0 : i64, scratch_operands = 0 : i64, tpu.core_type = #tpu.core_type<tc>, window_params = [{transform_indices = @transform_0, window_bounds = array<i64: 1, 64, 64>}, {transform_indices = @transform_1, window_bounds = array<i64: 1, 64, 64>}, {transform_indices = @transform_2, window_bounds = array<i64: 1, 64, 1>}, {transform_indices = @transform_3, window_bounds = array<i64: 1, 1, 64>}, {transform_indices = @transform_4, window_bounds = array<i64: 1, 64, 4>}]} {
    %c0 = arith.constant 0 : index
    %c0_0 = arith.constant 0 : index
    %c0_1 = arith.constant 0 : index
    %0 = vector.load %arg2[%c0, %c0_0, %c0_1] : memref<1x64x64xf32, #tpu.memory_space<vmem>>, vector<1x64x64xf32>
    %1 = vector.shape_cast %0 : vector<1x64x64xf32> to vector<64x64xf32>
    %cst = arith.constant 9.99999997E-7 : f32
    %cst_2 = arith.constant 0.999998986 : f32
    %2 = vector.broadcast %cst : f32 to vector<64x64xf32>
    %3 = arith.maximumf %2, %1 : vector<64x64xf32>
    %4 = vector.broadcast %cst_2 : f32 to vector<64x64xf32>
    %5 = arith.minimumf %4, %3 : vector<64x64xf32>
    %c0_3 = arith.constant 0 : index
    %c0_4 = arith.constant 0 : index
    %c0_5 = arith.constant 0 : index
    %6 = vector.load %arg3[%c0_3, %c0_4, %c0_5] : memref<1x64x64xf32, #tpu.memory_space<vmem>>, vector<1x64x64xf32>
    %7 = vector.shape_cast %6 : vector<1x64x64xf32> to vector<64x64xf32>
    %cst_6 = arith.constant 1.000000e+00 : f32
    %8 = vector.broadcast %cst_6 : f32 to vector<64x64xf32>
    %9 = arith.cmpf oeq, %7, %8 : vector<64x64xf32>
    %cst_7 = arith.constant 0.000000e+00 : f32
    %10 = vector.broadcast %cst_7 : f32 to vector<64x64xf32>
    %11 = arith.cmpf oeq, %7, %10 : vector<64x64xf32>
    %12 = arith.extui %9 : vector<64x64xi1> to vector<64x64xi32>
    %13 = arith.sitofp %12 : vector<64x64xi32> to vector<64x64xf32>
    %14 = arith.extui %11 : vector<64x64xi1> to vector<64x64xi32>
    %15 = arith.sitofp %14 : vector<64x64xi32> to vector<64x64xf32>
    %cst_8 = arith.constant 1.000000e+00 : f32
    %16 = vector.broadcast %cst_8 : f32 to vector<64x64xf32>
    %17 = arith.subf %16, %5 : vector<64x64xf32>
    %18 = arith.select %9, %5, %17 : vector<64x64xi1>, vector<64x64xf32>
    %cst_9 = arith.constant 1.000000e+00 : f32
    %19 = vector.broadcast %cst_9 : f32 to vector<64x64xf32>
    %20 = arith.subf %19, %18 : vector<64x64xf32>
    %cst_10 = arith.constant -2.500000e-01 : f32
    %21 = vector.broadcast %cst_10 : f32 to vector<64x64xf32>
    %22 = arith.mulf %21, %20 : vector<64x64xf32>
    %23 = arith.mulf %22, %20 : vector<64x64xf32>
    %24 = math.log %18 : vector<64x64xf32>
    %25 = arith.mulf %23, %24 : vector<64x64xf32>
    %c0_11 = arith.constant 0 : index
    %c0_12 = arith.constant 0 : index
    %c0_13 = arith.constant 0 : index
    %26 = vector.load %arg5[%c0_11, %c0_12, %c0_13] : memref<1x1x64xf32, #tpu.memory_space<vmem>>, vector<1x1x64xf32>
    %27 = vector.shape_cast %26 : vector<1x1x64xf32> to vector<1x64xf32>
    %28 = vector.broadcast %27 : vector<1x64xf32> to vector<64x64xf32>
    %29 = arith.mulf %25, %28 : vector<64x64xf32>
    %30 = arith.mulf %29, %13 : vector<64x64xf32>
    %cst_14 = arith.constant dense<0.000000e+00> : vector<64xf32>
    %31 = vector.multi_reduction <add>, %30, %cst_14 [1] : vector<64x64xf32> to vector<64xf32>
    %32 = vector.shape_cast %31 : vector<64xf32> to vector<64x1xf32>
    %33 = arith.mulf %29, %15 : vector<64x64xf32>
    %cst_15 = arith.constant dense<0.000000e+00> : vector<64xf32>
    %34 = vector.multi_reduction <add>, %33, %cst_15 [1] : vector<64x64xf32> to vector<64xf32>
    %35 = vector.shape_cast %34 : vector<64xf32> to vector<64x1xf32>
    %cst_16 = arith.constant dense<0.000000e+00> : vector<64xf32>
    %36 = vector.multi_reduction <add>, %13, %cst_16 [1] : vector<64x64xf32> to vector<64xf32>
    %37 = vector.shape_cast %36 : vector<64xf32> to vector<64x1xf32>
    %cst_17 = arith.constant dense<0.000000e+00> : vector<64xf32>
    %38 = vector.multi_reduction <add>, %15, %cst_17 [1] : vector<64x64xf32> to vector<64xf32>
    %39 = vector.shape_cast %38 : vector<64xf32> to vector<64x1xf32>
    %c0_18 = arith.constant 0 : index
    %c0_19 = arith.constant 0 : index
    %c0_20 = arith.constant 0 : index
    %40 = vector.load %arg4[%c0_18, %c0_19, %c0_20] : memref<1x64x1xf32, #tpu.memory_space<vmem>>, vector<1x64x1xf32>
    %41 = vector.shape_cast %40 : vector<1x64x1xf32> to vector<64x1xf32>
    %42 = arith.mulf %32, %41 : vector<64x1xf32>
    %43 = arith.mulf %35, %41 : vector<64x1xf32>
    %c0_21 = arith.constant 0 : index
    %c0_22 = arith.constant 0 : index
    %c0_23 = arith.constant 0 : index
    %44 = vector.load %arg6[%c0_21, %c0_22, %c0_23] : memref<1x64x4xf32, #tpu.memory_space<vmem>>, vector<1x64x1xf32>
    %45 = vector.shape_cast %44 : vector<1x64x1xf32> to vector<64x1xf32>
    %46 = vector.shape_cast %42 : vector<64x1xf32> to vector<1x64x1xf32>
    tpu.vector_store %arg6[%c0_21, %c0_22, %c0_23], %46 {strides = array<i32>} : memref<1x64x4xf32, #tpu.memory_space<vmem>>, vector<1x64x1xf32>,
    %c0_24 = arith.constant 0 : index
    %c0_25 = arith.constant 0 : index
    %c1 = arith.constant 1 : index
    %47 = vector.load %arg6[%c0_24, %c0_25, %c1] : memref<1x64x4xf32, #tpu.memory_space<vmem>>, vector<1x64x1xf32>
    %48 = vector.shape_cast %47 : vector<1x64x1xf32> to vector<64x1xf32>
    %49 = vector.shape_cast %43 : vector<64x1xf32> to vector<1x64x1xf32>
    tpu.vector_store %arg6[%c0_24, %c0_25, %c1], %49 {strides = array<i32>} : memref<1x64x4xf32, #tpu.memory_space<vmem>>, vector<1x64x1xf32>,
    %c0_26 = arith.constant 0 : index
    %c0_27 = arith.constant 0 : index
    %c2 = arith.constant 2 : index
    %50 = vector.load %arg6[%c0_26, %c0_27, %c2] : memref<1x64x4xf32, #tpu.memory_space<vmem>>, vector<1x64x1xf32>
    %51 = vector.shape_cast %50 : vector<1x64x1xf32> to vector<64x1xf32>
    %52 = vector.shape_cast %37 : vector<64x1xf32> to vector<1x64x1xf32>
    tpu.vector_store %arg6[%c0_26, %c0_27, %c2], %52 {strides = array<i32>} : memref<1x64x4xf32, #tpu.memory_space<vmem>>, vector<1x64x1xf32>,
    %c0_28 = arith.constant 0 : index
    %c0_29 = arith.constant 0 : index
    %c3 = arith.constant 3 : index
    %53 = vector.load %arg6[%c0_28, %c0_29, %c3] : memref<1x64x4xf32, #tpu.memory_space<vmem>>, vector<1x64x1xf32>
    %54 = vector.shape_cast %53 : vector<1x64x1xf32> to vector<64x1xf32>
    %55 = vector.shape_cast %39 : vector<64x1xf32> to vector<1x64x1xf32>
    tpu.vector_store %arg6[%c0_28, %c0_29, %c3], %55 {strides = array<i32>} : memref<1x64x4xf32, #tpu.memory_space<vmem>>, vector<1x64x1xf32>,
    return
  }
  func.func @transform_0(%arg0: i32, %arg1: i32) -> (i32, i32, i32) {
    %c0_i32 = arith.constant 0 : i32
    %c0_i32_0 = arith.constant 0 : i32
    return %arg0, %arg1, %c0_i32 : i32, i32, i32
  }
  func.func @transform_1(%arg0: i32, %arg1: i32) -> (i32, i32, i32) {
    %c0_i32 = arith.constant 0 : i32
    %c0_i32_0 = arith.constant 0 : i32
    return %arg0, %arg1, %c0_i32 : i32, i32, i32
  }
  func.func @transform_2(%arg0: i32, %arg1: i32) -> (i32, i32, i32) {
    %c0_i32 = arith.constant 0 : i32
    %c0_i32_0 = arith.constant 0 : i32
    return %arg0, %arg1, %c0_i32 : i32, i32, i32
  }
  func.func @transform_3(%arg0: i32, %arg1: i32) -> (i32, i32, i32) {
    %c0_i32 = arith.constant 0 : i32
    %c0_i32_0 = arith.constant 0 : i32
    %c0_i32_1 = arith.constant 0 : i32
    return %arg0, %c0_i32, %c0_i32_0 : i32, i32, i32
  }
  func.func @transform_4(%arg0: i32, %arg1: i32) -> (i32, i32, i32) {
    %c0_i32 = arith.constant 0 : i32
    %c0_i32_0 = arith.constant 0 : i32
    return %arg0, %arg1, %c0_i32 : i32, i32, i32
  }
}

module attributes {stable_mosaic.version = 11 : i64} {
  func.func @_fine_kernel(%arg0: memref<3x64xf32, #tpu.memory_space<vmem>>, %arg1: memref<2x64xf32, #tpu.memory_space<vmem>>, %arg2: memref<2xf32, #tpu.memory_space<smem>>) attributes {dimension_semantics = [], scalar_prefetch = 0 : i64, scratch_operands = 0 : i64, tpu.core_type = #tpu.core_type<tc>} {
    %c0 = arith.constant 0 : index
    %c0_0 = arith.constant 0 : index
    %0 = vector.load %arg0[%c0, %c0_0] : memref<3x64xf32, #tpu.memory_space<vmem>>, vector<3x64xf32>
    %c0_1 = arith.constant 0 : index
    %c0_2 = arith.constant 0 : index
    %1 = vector.load %arg1[%c0_1, %c0_2] : memref<2x64xf32, #tpu.memory_space<vmem>>, vector<2x64xf32>
    %2 = vector.extract_strided_slice %0 {offsets = [0, 0], sizes = [1, 64], strides = [1, 1]} : vector<3x64xf32> to vector<1x64xf32>
    %3 = vector.extract_strided_slice %0 {offsets = [1, 0], sizes = [1, 64], strides = [1, 1]} : vector<3x64xf32> to vector<1x64xf32>
    %4 = vector.extract_strided_slice %0 {offsets = [2, 0], sizes = [1, 64], strides = [1, 1]} : vector<3x64xf32> to vector<1x64xf32>
    %5 = vector.extract_strided_slice %1 {offsets = [0, 0], sizes = [1, 64], strides = [1, 1]} : vector<2x64xf32> to vector<1x64xf32>
    %6 = vector.extract_strided_slice %1 {offsets = [1, 0], sizes = [1, 64], strides = [1, 1]} : vector<2x64xf32> to vector<1x64xf32>
    %cst = arith.constant 1.000000e-10 : f32
    %7 = vector.broadcast %cst : f32 to vector<1x64xf32>
    %8 = arith.maximumf %4, %7 : vector<1x64xf32>
    %cst_3 = arith.constant 1.000000e+00 : f32
    %9 = vector.broadcast %cst_3 : f32 to vector<1x64xf32>
    %10 = arith.divf %9, %8 : vector<1x64xf32>
    %11 = vector.shape_cast %10 : vector<1x64xf32> to vector<1x1x64xf32>
    %cst_4 = arith.constant dense<0.000000e+00> : vector<1xf32>
    %12 = vector.multi_reduction <add>, %11, %cst_4 [1, 2] : vector<1x1x64xf32> to vector<1xf32>
    %13 = vector.shape_cast %12 : vector<1xf32> to vector<1x1x1xf32>
    %14 = vector.extract %13[0, 0, 0] : f32 from vector<1x1x1xf32>
    %cst_5 = arith.constant 6.400000e+01 : f32
    %15 = arith.divf %14, %cst_5 : f32
    %16 = vector.broadcast %15 : f32 to vector<1x64xf32>
    %17 = arith.divf %10, %16 : vector<1x64xf32>
    %18 = math.absf %5 : vector<1x64xf32>
    %19 = math.absf %6 : vector<1x64xf32>
    %20 = arith.maximumf %18, %19 : vector<1x64xf32>
    %cst_6 = arith.constant 1.000000e+00 : f32
    %21 = vector.broadcast %cst_6 : f32 to vector<1x64xf32>
    %22 = arith.cmpf olt, %20, %21 : vector<1x64xf32>
    %23 = arith.extui %22 : vector<1x64xi1> to vector<1x64xi32>
    %24 = arith.sitofp %23 : vector<1x64xi32> to vector<1x64xf32>
    %25 = vector.shape_cast %24 : vector<1x64xf32> to vector<1x1x64xf32>
    %cst_7 = arith.constant dense<0.000000e+00> : vector<1xf32>
    %26 = vector.multi_reduction <add>, %25, %cst_7 [1, 2] : vector<1x1x64xf32> to vector<1xf32>
    %27 = vector.shape_cast %26 : vector<1xf32> to vector<1x1x1xf32>
    %28 = vector.extract %27[0, 0, 0] : f32 from vector<1x1x1xf32>
    %cst_8 = arith.constant 0.000000e+00 : f32
    %29 = arith.cmpf ogt, %28, %cst_8 : f32
    %30 = tpu.iota {dimensions = array<i32: 1>} : vector<1x64xi32>
    %c0_i32 = arith.constant 0 : i32
    %31 = vector.broadcast %c0_i32 : i32 to vector<1x64xi32>
    %32 = arith.cmpi eq, %30, %31 : vector<1x64xi32>
    %true = arith.constant true
    %33 = arith.xori %29, %true : i1
    %34 = vector.broadcast %33 : i1 to vector<1x64xi1>
    %35 = arith.andi %34, %32 : vector<1x64xi1>
    %36 = arith.ori %22, %35 : vector<1x64xi1>
    %cst_9 = arith.constant 0.000000e+00 : f32
    %37 = vector.broadcast %cst_9 : f32 to vector<1x64xf32>
    %38 = arith.select %35, %37, %17 : vector<1x64xi1>, vector<1x64xf32>
    %39 = arith.extui %36 : vector<1x64xi1> to vector<1x64xi32>
    %40 = arith.sitofp %39 : vector<1x64xi32> to vector<1x64xf32>
    %41 = arith.subf %5, %2 : vector<1x64xf32>
    %42 = arith.subf %6, %3 : vector<1x64xf32>
    %43 = arith.mulf %41, %41 : vector<1x64xf32>
    %44 = arith.mulf %42, %42 : vector<1x64xf32>
    %45 = arith.addf %43, %44 : vector<1x64xf32>
    %46 = arith.mulf %45, %38 : vector<1x64xf32>
    %47 = arith.mulf %46, %40 : vector<1x64xf32>
    %48 = vector.shape_cast %47 : vector<1x64xf32> to vector<1x1x64xf32>
    %cst_10 = arith.constant dense<0.000000e+00> : vector<1xf32>
    %49 = vector.multi_reduction <add>, %48, %cst_10 [1, 2] : vector<1x1x64xf32> to vector<1xf32>
    %50 = vector.shape_cast %49 : vector<1xf32> to vector<1x1x1xf32>
    %51 = vector.extract %50[0, 0, 0] : f32 from vector<1x1x1xf32>
    %c0_11 = arith.constant 0 : index
    %52 = memref.load %arg2[%c0_11] : memref<2xf32, #tpu.memory_space<smem>>
    memref.store %51, %arg2[%c0_11] : memref<2xf32, #tpu.memory_space<smem>>
    %53 = vector.shape_cast %40 : vector<1x64xf32> to vector<1x1x64xf32>
    %cst_12 = arith.constant dense<0.000000e+00> : vector<1xf32>
    %54 = vector.multi_reduction <add>, %53, %cst_12 [1, 2] : vector<1x1x64xf32> to vector<1xf32>
    %55 = vector.shape_cast %54 : vector<1xf32> to vector<1x1x1xf32>
    %56 = vector.extract %55[0, 0, 0] : f32 from vector<1x1x1xf32>
    %c1 = arith.constant 1 : index
    %57 = memref.load %arg2[%c1] : memref<2xf32, #tpu.memory_space<smem>>
    memref.store %56, %arg2[%c1] : memref<2xf32, #tpu.memory_space<smem>>
    return
  }
}

</mosaic_0001>

<bundles_post_ra>
// kernel: loftr_loss_forward.2
= control target key start
LH: loop header
LB: loop body
LE: loop exit
PB: predicated region body
PF: predicated region fallthrough
CT: control target
= control target key end

     0   :  { %9 = vsyncpa [#allocation3], 0  ;;  %s1459_s0 = inlined_call_operand.vmem [shape: f32[2,64,64], index: 0, kind: input, shape index: {}]   ;;  %s1460_s1 = inlined_call_operand.hbm [shape: f32[2,64,64], index: 1, kind: input, shape index: {}]   ;;  %s1461_s2 = inlined_call_operand.vmem [shape: f32[2,64,1], index: 2, kind: input, shape index: {}]   ;;  %s1462_s3 = inlined_call_operand.vmem [shape: f32[2,1,64], index: 3, kind: input, shape index: {}]   ;;  %s1463_s4 = inlined_call_operand.vmem [shape: f32[2,64,4], index: 4, kind: output, shape index: {}]  }
   0x1   :  { %11 = vsyncpa [#allocation3 + $0x1], 0  ;;  %s1059_s15 = smov 0   ;;  %s1061_s16 = smov 0  }
   0x2   :  { %s1063_s17 = smov 0   ;;  %s1065_s18 = smov 0  }
   0x3   :  { %s1067_s19 = smov 0   ;;  %s1069_s20 = smov 0  }
   0x4 LB: > { %s836_s21 = sadd.s32 4294967295, %s1027_s20   ;;  %s29_s22 = sadd.s32 1, %s1023_s19  ;;  %s1027_s20 = sphi %s1069_s20, %s17_s20   ;;  %s1023_s19 = sphi %s1067_s19, %s1471_s19   ;;  %s1019_s18 = sphi %s1065_s18, %s1470_s18   ;;  %s1015_s17 = sphi %s1063_s17, %s1469_s17   ;;  %s1011_s16 = sphi %s1061_s16, %s1468_s16   ;;  %s1007_s15 = sphi %s1059_s15, %s1467_s15  }
   0x5   : > { %p31_p0 = scmp.ge.s32.totalorder %s29_s22, 2  ;;  %s66_s23 = sadd.s32 1, %s1015_s17 }
   0x6   : > { %p73_p1 = scmp.ne.s32.totalorder %s1015_s17, %s1011_s16  ;;  %p74_p2 = scmp.eq.s32.totalorder %s1027_s20, 0 }
   0x7   : > { %s1473_s22 = smov (%p31_p0, %s29_s22), 0  ;;  %p79_p4 = scmp.ne.s32.totalorder %s1011_s16, %s1007_s15 }
   0x8   : > { %p1095_p3 = por %p74_p2, %p73_p1  ;;  %s61_s25 = ssub.s32 %s1023_s19, %s1473_s22 }
   0x9   : > { %p80_p5 = scmp.eq.s32.totalorder %s836_s21, 0  ;;  %p64_p6 = scmp.eq.s32.totalorder %s61_s25, 0 }
   0xa   : > { %p880_p8 = scmp.lt.s32.totalorder %s1027_s20, 2  ;;  %s198_s28 = sand.u32 1, %s1015_s17  }
   0xb   : > { %p1102_p7 = por %p80_p5, %p79_p4  ;;  %s870_s29 = sshll.u32 %s1023_s19, 10 }
   0xc   : > { %s1108_s27 = scalar_select %p64_p6, %s1015_s17, %s66_s23  }
   0xd   : > { %s840_s30 = sshll.u32 %s198_s28, 6  ;;  %s210_s7 = scalar_lea.hbm %s1460_s1, %s870_s29 }
   0xe   : > { %s202_s8 = scalar_lea.vmem [#allocation2], %s840_s30  ;;  %p1117_p9 = pnand %p880_p8, %p1095_p3 }
   0xf   : > { %s211_s9 = sshll.u32 %s202_s8, 4  ;;  %s199_s11 = scalar_lea.sflag [#allocation3], %s198_s28  ;;  %s212_s9 = int_to_ptr.vmem [resolvable:$true] %s211_s9 }
  0x10   : > { %p951_p10 = pneg %p1117_p9  ;;  %s962_s12 = scalar_lea.vmem %s212_s9, 1024 }
  0x11   : > { %p963_p11 = scmp.ne.s32.totalorder %s212_s9, %s962_s12  ;;  %s1029_s13 = smov [#allocation2]  }
  0x12   : > { %s967_s14 = sshll.u32 %s1029_s13, 4  ;;  %s968_s14 = int_to_ptr.vmem [resolvable:$false] %s967_s14 }
  0x13   : > { %p965_p12 = pnand %p963_p11, %p951_p10  ;;  %s969_s15 = scalar_lea.vmem %s968_s14, 2048 }
  0x14   : > { %p970_p0 = scmp.lt.s32.totalorder %s212_s9, %s968_s14  ;;  %p971_p1 = scmp.lt.s32.totalorder %s969_s15, %s962_s12 }
  0x15   : > { %p966_p13 = pneg %p965_p12 }
  0x16   : > { %p972_p2 = por %p971_p1, %p970_p0 }
  0x18   : > { %p973_p3 = pnand %p972_p2, %p966_p13 }
  0x1a   : > { %976 = shalt.err (!%p973_p3)
}
  0x1b   : > { %s1030_s21 = smov 128   ;;  %s1031_s23 = smov 8  }
  0x1c   : > { %879 = dma.hbm_to_vmem [thread:$0]  (!%p1117_p9), %s210_s7, 1024, %s212_s9, %s199_s11, %s1030_s21, %s1030_s21, %s1031_s23  }
  0x1d   : > { %p843_p4 = scmp.ge.s32.totalorder %s1027_s20, 1  ;;  %p238_p5 = scmp.lt.s32.totalorder %s1027_s20, 3 }
  0x1f   : > { %p239_p6 = pnand %p843_p4, %p238_p5 }
  0x20   : > { %s244_s24 = sand.u32 (!%p239_p6), 1, %s1011_s16  }
  0x21   : > { %242 = sbr.rel (%p239_p6) target bundleno = 353 (0x161), region = 36  ;;  %s844_s25 = sshll.u32 (!%p239_p6), %s244_s24, 6 }
  0x22   : > { %s245_s28 = scalar_lea.sflag (!%p239_p6), [#allocation3], %s244_s24  ;;  %s1128_s29 = scalar_lea.vmem (!%p239_p6), [#allocation2], %s844_s25 }
  0x26   : > { %1002 = dma.done.wait (%p1102_p7), %s245_s28, 1024  }
  0x27   : > { %1004 = vsyncadd (%p1102_p7), %s245_s28, 4294966272  ;;  %p299_p8 = scmp.lt.s32.totalorder %s1019_s18, 1  ;;  %v1148_v0 = vld [vmem:[%s1128_s29] sm:$0xff]  ;;  %vm499_vm0 = vcmask 523264   ;;  %v1153_v3 = vld [vmem:[%s1128_s29 + $0x10] sm:$0xff]  ;;  %v1032_v5 = vmov 0.0  }
  0x28   : > { %vm364_vm1 = vcmp.eq.f32.partialorder %v1148_v0, 1.0  ;;  %vm366_vm2 = vcmp.eq.f32.partialorder %v1153_v3, 1.0  ;;  %v1163_v8 = vld [vmem:[%s1128_s29 + $0x8] sm:$0xff]  ;;  %v1175_v13 = vld [vmem:[%s1128_s29 + $0x18] sm:$0xff]  ;;  %v1201_v32 = vld [vmem:[%s1128_s29 + $0x20] sm:$0xff]  ;;  %vm372_vm6 = vcmp.eq.f32.partialorder %v1148_v0, 0.0 }
  0x29   : > { %s1475_s18 = smov (!%p299_p8, %s1019_s18), 1  ;;  %v1159_v6 = vsel %vm364_vm1, 1.0, %v1032_v5  ;;  %v1171_v12 = vsel %vm366_vm2, 1.0, %v1032_v5  ;;  %vm365_vm3 = vcmp.eq.f32.partialorder %v1163_v8, 1.0  ;;  %vm367_vm4 = vcmp.eq.f32.partialorder %v1175_v13, 1.0  ;;  %v1211_v44 = vld [vmem:[%s1128_s29 + $0x30] sm:$0xff] }
  0x2a   : > { %s1139_s30 = sshll.u32 %s1475_s18, 6  ;;  %v556_v10 = vsel %vm499_vm0, %v1159_v6, 0.0  ;;  %v1180_v15 = vsel %vm365_vm3, 1.0, %v1032_v5  ;;  %v562_v18 = vsel %vm499_vm0, %v1171_v12, 0.0  ;;  %v1193_v25 = vsel %vm367_vm4, 1.0, %v1032_v5  ;;  %v1217_v52 = vld [vmem:[%s1128_s29 + $0x28] sm:$0xff]  ;;  %s321_s9 = scalar_lea.vmem %s1462_s3, %s1475_s18 }
  0x2b   : > { %s1145_s7 = scalar_lea.vmem %s1459_s0, %s1139_s30  ;;  %557 = vadd.xlane.f32.xlu0 %v556_v10  ;;  %v559_v19 = vsel %vm499_vm0, %v1180_v15, 0.0  ;;  %v565_v28 = vsel %vm499_vm0, %v1193_v25, 0.0  ;;  %vm368_vm5 = vcmp.eq.f32.partialorder %v1201_v32, 1.0  ;;  %vm370_vm7 = vcmp.eq.f32.partialorder %v1211_v44, 1.0  ;;  %v1223_v57 = vld [vmem:[%s1128_s29 + $0x38] sm:$0xff]  ;;  %s317_s11 = scalar_lea.vmem %s1461_s2, %s1139_s30 }
  0x2c   : > { %v332_v1 = vld [vmem:[%s1145_s7] sm:$0xff]  ;;  %v334_v4 = vld [vmem:[%s1145_s7 + $0x10] sm:$0xff]  ;;  %v333_v9 = vld [vmem:[%s1145_s7 + $0x8] sm:$0xff]  ;;  %560 = vadd.xlane.f32.xlu1 %v559_v19  ;;  %vm374_vm8 = vcmp.eq.f32.partialorder %v1153_v3, 0.0  ;;  %vm369_vm9 = vcmp.eq.f32.partialorder %v1217_v52, 1.0  ;;  %vm371_vm10 = vcmp.eq.f32.partialorder %v1223_v57, 1.0  ;;  %s1370_s15 = scalar_lea.vmem %s1463_s4, %s1139_s30 }
  0x2d   : > { %v340_v2 = vmax.f32 %v332_v1, 1e-06  ;;  %v342_v7 = vmax.f32 %v334_v4, 1e-06  ;;  %v335_v16 = vld [vmem:[%s1145_s7 + $0x18] sm:$0xff]  ;;  %v336_v26 = vld [vmem:[%s1145_s7 + $0x20] sm:$0xff] }
  0x2e   : > { %v341_v20 = vmax.f32 %v333_v9, 1e-06  ;;  %v343_v22 = vmax.f32 %v335_v16, 1e-06  ;;  %v344_v31 = vmax.f32 %v336_v26, 1e-06 }
  0x2f   : > { %v348_v11 = vmin.f32 %v340_v2, 0.999999  ;;  %v350_v14 = vmin.f32 %v342_v7, 0.999999  ;;  %563 = vadd.xlane.f32.xlu0 %v562_v18  ;;  %v338_v38 = vld [vmem:[%s1145_s7 + $0x30] sm:$0xff]  ;;  %v337_v41 = vld [vmem:[%s1145_s7 + $0x28] sm:$0xff] }
  0x30   : > { %v349_v24 = vmin.f32 %v341_v20, 0.999999  ;;  %v351_v30 = vmin.f32 %v343_v22, 0.999999  ;;  %566 = vadd.xlane.f32.xlu1 %v565_v28  ;;  %v352_v37 = vmin.f32 %v344_v31, 0.999999 }
  0x31   : > { %v412_v17 = vsub.f32 1.0, %v348_v11  ;;  %v414_v21 = vsub.f32 1.0, %v350_v14  ;;  %v346_v43 = vmax.f32 %v338_v38, 1e-06  ;;  %v339_v45 = vld [vmem:[%s1145_s7 + $0x38] sm:$0xff]  ;;  %vm373_vm11 = vcmp.eq.f32.partialorder %v1163_v8, 0.0 }
  0x32   : > { %v413_v29 = vsub.f32 1.0, %v349_v24  ;;  %v415_v35 = vsub.f32 1.0, %v351_v30  ;;  %v416_v40 = vsub.f32 1.0, %v352_v37  ;;  %v345_v51 = vmax.f32 %v337_v41, 1e-06  ;;  %s1033_s12 = smov 1  }
  0x33   : > { %v420_v23 = vsel %vm364_vm1, %v348_v11, %v412_v17  ;;  %v422_v27 = vsel %vm366_vm2, %v350_v14, %v414_v21  ;;  %v354_v50 = vmin.f32 %v346_v43, 0.999999  ;;  %v347_v53 = vmax.f32 %v339_v45, 1e-06  ;;  %v1233_v10 = vld [vmem:[%s321_s9] ss:$0 sm:$0xff] }
  0x34   : > { %933 = vlog2.f32 %v420_v23  ;;  %v428_v33 = vsub.f32 1.0, %v420_v23  ;;  %v421_v34 = vsel %vm365_vm3, %v349_v24, %v413_v29  ;;  %v430_v36 = vsub.f32 1.0, %v422_v27 }
  0x35   : > { %935 = vlog2.f32 %v422_v27  ;;  %v423_v39 = vsel %vm367_vm4, %v351_v30, %v415_v35  ;;  %v429_v47 = vsub.f32 1.0, %v421_v34  ;;  %v424_v48 = vsel %vm368_vm5, %v352_v37, %v416_v40 }
  0x36   : > { %937 = vlog2.f32 %v421_v34  ;;  %v436_v42 = vmul.f32 -0.25, %v428_v33  ;;  %v438_v46 = vmul.f32 -0.25, %v430_v36  ;;  %v431_v49 = vsub.f32 1.0, %v423_v39 }
  0x37   : > { %939 = vlog2.f32 %v423_v39  ;;  %v418_v55 = vsub.f32 1.0, %v354_v50  ;;  %v353_v56 = vmin.f32 %v345_v51, 0.999999  ;;  %v437_v59 = vmul.f32 -0.25, %v429_v47 }
  0x38   : > { %941 = vlog2.f32 %v424_v48  ;;  %v444_v54 = vmul.f32 %v436_v42, %v428_v33  ;;  %v446_v58 = vmul.f32 %v438_v46, %v430_v36  ;;  %v355_v60 = vmin.f32 %v347_v53, 0.999999 }
  0x39   : > { %v439_v62 = vmul.f32 -0.25, %v431_v49  ;;  %v432_v63 = vsub.f32 1.0, %v424_v48  ;;  %v426_v1 = vsel %vm370_vm7, %v354_v50, %v418_v55  ;;  %v417_v2 = vsub.f32 1.0, %v353_v56 }
  0x3a   : > { %943 = vlog2.f32 %v426_v1  ;;  %v419_v9 = vsub.f32 1.0, %v355_v60  ;;  %v445_v17 = vmul.f32 %v437_v59, %v429_v47  ;;  %v1241_v18 = vsel %vm372_vm6, 1.0, %v1032_v5 }
  0x3b   : > { %v425_v14 = vsel %vm369_vm9, %v353_v56, %v417_v2  ;;  %v1246_v20 = vsel %vm374_vm8, 1.0, %v1032_v5  ;;  %v440_v22 = vmul.f32 -0.25, %v432_v63  ;;  %v447_v27 = vmul.f32 %v439_v62, %v431_v49 }
  0x3c   : > { %945 = vlog2.f32 %v425_v14  ;;  %v427_v23 = vsel %vm371_vm10, %v355_v60, %v419_v9  ;;  %v434_v28 = vsub.f32 1.0, %v426_v1  ;;  %vm375_vm12 = vcmp.eq.f32.partialorder %v1175_v13, 0.0 }
  0x3d   : > { %947 = vlog2.f32 %v427_v23  ;;  %v433_v33 = vsub.f32 1.0, %v425_v14  ;;  %v1259_v34 = vsel %vm373_vm11, 1.0, %v1032_v5  ;;  %vm376_vm13 = vcmp.eq.f32.partialorder %v1201_v32, 0.0 }
  0x3e   : > { %v448_v36 = vmul.f32 %v440_v22, %v432_v63  ;;  %v442_v41 = vmul.f32 -0.25, %v434_v28  ;;  %v1270_v8 = vsel %vm375_vm12, 1.0, %v1032_v5  ;;  %v435_v45 = vsub.f32 1.0, %v427_v23 }
  0x3f   : > { %v441_v48 = vmul.f32 -0.25, %v433_v33  ;;  %v1278_v51 = vsel %vm376_vm13, 1.0, %v1032_v5  ;;  %vm378_vm14 = vcmp.eq.f32.partialorder %v1211_v44, 0.0  ;;  %vm377_vm15 = vcmp.eq.f32.partialorder %v1217_v52, 0.0 }
  0x40   : > { %v450_v13 = vmul.f32 %v442_v41, %v434_v28  ;;  %v443_v56 = vmul.f32 -0.25, %v435_v45  ;;  %vm379_vm1 = vcmp.eq.f32.partialorder %v1223_v57, 0.0  ;;  %v858_v44 = vsel %vm371_vm10, 1.0, %v1032_v5 }
  0x41   : > { %v934_v61 = vpop.eup %933  ;;  %v449_v60 = vmul.f32 %v441_v48, %v433_v33  ;;  %v866_v28 = vsel %vm379_vm1, 1.0, %v1032_v5  ;;  %v577_v57 = vsel %vm499_vm0, %v858_v44, 0.0  ;;  %v583_v48 = vsel %vm499_vm0, %v1259_v34, 0.0 }
  0x42   : > { %v936_v4 = vpop.eup %935  ;;  %v453_v7 = vmul.f32 0.6931472, %v934_v61  ;;  %vm669_vm2 = vcmask 15368   ;;  %vm678_vm3 = vcmask 23568   ;;  %vm687_vm4 = vcmask 31768  }
  0x43   : > { %v457_v11 = vmul.f32 0.6931472, %v936_v4  ;;  %v938_v19 = vpop.eup %937  ;;  %v1288_v4 = vsel %vm378_vm14, 1.0, %v1032_v5 }
  0x44   : > { %v468_v16 = vmul.f32 %v453_v7, %v444_v54  ;;  %v455_v26 = vmul.f32 0.6931472, %v938_v19  ;;  %v940_v0 = vpop.eup %939  ;;  %v451_v7 = vmul.f32 %v443_v56, %v435_v45 }
  0x45   : > { %v470_v21 = vmul.f32 %v457_v11, %v446_v58  ;;  %v459_v31 = vmul.f32 0.6931472, %v940_v0  ;;  %v942_v37 = vpop.eup %941 }
  0x46   : > { %v483_v24 = vmul.f32 %v1233_v10, %v468_v16  ;;  %v469_v3 = vmul.f32 %v455_v26, %v445_v17  ;;  %v461_v43 = vmul.f32 0.6931472, %v942_v37  ;;  %v1292_v16 = vsel %vm377_vm15, 1.0, %v1032_v5 }
  0x47   : > { %v1252_v29 = vmul.f32 %v1233_v10, %v470_v21  ;;  %v471_v40 = vmul.f32 %v459_v31, %v447_v27  ;;  %v944_v54 = vpop.eup %943  ;;  %v855_v31 = vsel %vm368_vm5, 1.0, %v1032_v5  ;;  %v857_v37 = vsel %vm370_vm7, 1.0, %v1032_v5 }
  0x48   : > { %v524_v30 = vmul.f32 %v1241_v18, %v483_v24  ;;  %v484_v38 = vmul.f32 %v1233_v10, %v469_v3  ;;  %v472_v49 = vmul.f32 %v461_v43, %v448_v36  ;;  %v465_v59 = vmul.f32 0.6931472, %v944_v54  ;;  %v604_v54 = vld [vmem:[%s317_s11] sm:$0xff] }
  0x49   : > { %v526_v35 = vmul.f32 %v1246_v20, %v1252_v29  ;;  %v486_v47 = vmul.f32 %v1233_v10, %v471_v40  ;;  %v946_v61 = vpop.eup %945  ;;  %v491_v19 = vmul.f32 %v1159_v6, %v483_v24  ;;  %v493_v6 = vmul.f32 %v1171_v12, %v1252_v29 }
  0x4a   : > { %v532_v39 = vsel %vm499_vm0, %v524_v30, 0.0  ;;  %v525_v46 = vmul.f32 %v1259_v34, %v484_v38  ;;  %v487_v55 = vmul.f32 %v1233_v10, %v472_v49  ;;  %v474_v63 = vmul.f32 %v465_v59, %v450_v13  ;;  %v948_v9 = vpop.eup %947 }
  0x4b   : > { %533 = vadd.xlane.f32.xlu0 %v532_v39  ;;  %v538_v42 = vsel %vm499_vm0, %v526_v35, 0.0  ;;  %v527_v53 = vmul.f32 %v1270_v8, %v486_v47  ;;  %v463_v1 = vmul.f32 0.6931472, %v946_v61  ;;  %v467_v17 = vmul.f32 0.6931472, %v948_v9  ;;  %v606_v61 = vld [vmem:[%s317_s11 + $0x10] sm:$0xff] }
  0x4c   : > { %539 = vadd.xlane.f32.xlu1 %v538_v42  ;;  %v535_v50 = vsel %vm499_vm0, %v525_v46, 0.0  ;;  %v528_v62 = vmul.f32 %v1278_v51, %v487_v55  ;;  %v489_v11 = vmul.f32 %v1233_v10, %v474_v63  ;;  %v500_v30 = vsel %vm499_vm0, %v491_v19, 0.0 }
  0x4d   : > { %v541_v58 = vsel %vm499_vm0, %v527_v53, 0.0  ;;  %v473_v14 = vmul.f32 %v463_v1, %v449_v60  ;;  %v475_v23 = vmul.f32 %v467_v17, %v451_v7  ;;  %v492_v33 = vmul.f32 %v1180_v15, %v484_v38  ;;  %v608_v1 = vld [vmem:[%s317_s11 + $0x20] sm:$0xff]  ;;  %v609_v17 = vld [vmem:[%s317_s11 + $0x28] sm:$0xff] }
  0x4e   : > { %v544_v2 = vsel %vm499_vm0, %v528_v62, 0.0  ;;  %v530_v21 = vmul.f32 %v1288_v4, %v489_v11  ;;  %v495_v36 = vmul.f32 %v855_v31, %v487_v55  ;;  %v494_v29 = vmul.f32 %v1193_v25, %v486_v47 }
  0x4f   : > { %536 = vadd.xlane.f32.xlu0 %v535_v50  ;;  %v488_v22 = vmul.f32 %v1233_v10, %v473_v14  ;;  %v490_v0 = vmul.f32 %v1233_v10, %v475_v23  ;;  %v506_v10 = vsel %vm499_vm0, %v493_v6, 0.0  ;;  %v503_v12 = vsel %vm499_vm0, %v492_v33, 0.0  ;;  %v610_v14 = vld [vmem:[%s317_s11 + $0x30] sm:$0xff]  ;;  %v611_v23 = vld [vmem:[%s317_s11 + $0x38] sm:$0xff] }
  0x50   : > { %542 = vadd.xlane.f32.xlu1 %v541_v58  ;;  %v550_v26 = vsel %vm499_vm0, %v530_v21, 0.0  ;;  %v856_v15 = vsel %vm369_vm9, 1.0, %v1032_v5  ;;  %v512_v32 = vsel %vm499_vm0, %v495_v36, 0.0  ;;  %v497_v38 = vmul.f32 %v857_v37, %v489_v11  ;;  %v605_v58 = vld [vmem:[%s317_s11 + $0x8] sm:$0xff] }
  0x51   : > { %v529_v27 = vmul.f32 %v1292_v16, %v488_v22  ;;  %v531_v24 = vmul.f32 %v866_v28, %v490_v0  ;;  %v509_v39 = vsel %vm499_vm0, %v494_v29, 0.0  ;;  %v496_v40 = vmul.f32 %v856_v15, %v488_v22 }
  0x52   : > { %v518_v41 = vsel %vm499_vm0, %v497_v38, 0.0  ;;  %v498_v42 = vmul.f32 %v858_v44, %v490_v0  ;;  %v568_v52 = vsel %vm499_vm0, %v855_v31, 0.0  ;;  %v574_v45 = vsel %vm499_vm0, %v857_v37, 0.0 }
  0x53   : > { %545 = vadd.xlane.f32.xlu0 %v544_v2  ;;  %v547_v3 = vsel %vm499_vm0, %v529_v27, 0.0  ;;  %v553_v35 = vsel %vm499_vm0, %v531_v24, 0.0  ;;  %v515_v25 = vsel %vm499_vm0, %v496_v40, 0.0  ;;  %v571_v46 = vsel %vm499_vm0, %v856_v15, 0.0  ;;  %v607_v2 = vld [vmem:[%s317_s11 + $0x18] sm:$0xff] }
  0x54   : > { %548 = vadd.xlane.f32.xlu1 %v547_v3  ;;  %v521_v43 = vsel %vm499_vm0, %v498_v42, 0.0  ;;  %v580_v5 = vsel %vm499_vm0, %v1241_v18, 0.0  ;;  %v586_v47 = vsel %vm499_vm0, %v1246_v20, 0.0  ;;  %v592_v49 = vsel %vm499_vm0, %v1278_v51, 0.0 }
  0x55   : > { %v589_v18 = vsel %vm499_vm0, %v1270_v8, 0.0  ;;  %v598_v50 = vsel %vm499_vm0, %v1288_v4, 0.0  ;;  %v595_v20 = vsel %vm499_vm0, %v1292_v16, 0.0  ;;  %v601_v34 = vsel %vm499_vm0, %v866_v28, 0.0 }
  0x56   : > { %vm628_vm0 = vcmask 7168  }
  0x57   : > { %551 = vadd.xlane.f32.xlu0 %v550_v26 }
  0x58   : > { %554 = vadd.xlane.f32.xlu1 %v553_v35 }
  0x5b   : > { %501 = vadd.xlane.f32.xlu0 %v500_v30 }
  0x5c   : > { %504 = vadd.xlane.f32.xlu1 %v503_v12 }
  0x5f   : > { %507 = vadd.xlane.f32.xlu0 %v506_v10 }
  0x60   : > { %510 = vadd.xlane.f32.xlu1 %v509_v39 }
  0x63   : > { %513 = vadd.xlane.f32.xlu0 %v512_v32 }
  0x64   : > { %516 = vadd.xlane.f32.xlu1 %v515_v25 }
  0x67   : > { %519 = vadd.xlane.f32.xlu0 %v518_v41 }
  0x68   : > { %522 = vadd.xlane.f32.xlu1 %v521_v43 }
  0x6b   : > { %569 = vadd.xlane.f32.xlu0 %v568_v52 }
  0x6c   : > { %572 = vadd.xlane.f32.xlu1 %v571_v46 }
  0x6f   : > { %575 = vadd.xlane.f32.xlu0 %v574_v45 }
  0x70   : > { %578 = vadd.xlane.f32.xlu1 %v577_v57 }
  0x73   : > { %581 = vadd.xlane.f32.xlu0 %v580_v5 }
  0x74   : > { %584 = vadd.xlane.f32.xlu1 %v583_v48 }
  0x77   : > { %587 = vadd.xlane.f32.xlu0 %v586_v47 }
  0x78   : > { %590 = vadd.xlane.f32.xlu1 %v589_v18 }
  0x7b   : > { %593 = vadd.xlane.f32.xlu0 %v592_v49 }
  0x7c   : > { %596 = vadd.xlane.f32.xlu1 %v595_v20 }
  0x7f   : > { %599 = vadd.xlane.f32.xlu0 %v598_v50 }
  0x80   : > { %602 = vadd.xlane.f32.xlu1 %v601_v34 }
  0xb4   : > { %v1347_v53 = vpop.xlane.xlu0 %557 }
  0xb5   : > { %v1349_v51 = vpop.xlane.xlu1 %560 }
  0xb8   : > { %v1351_v13 = vpop.xlane.xlu0 %563 }
  0xb9   : > { %v1357_v8 = vpop.xlane.xlu1 %566 }
  0xd4   : > { %v534_v55 = vpop.xlane.xlu0 %533 }
  0xd5   : > { %v620_v56 = vmul.f32 %v604_v54, %v534_v55  ;;  %v540_v59 = vpop.xlane.xlu1 %539 }
  0xd6   : > { %v622_v63 = vmul.f32 %v606_v61, %v540_v59 }
  0xd7   : > { %645 = vrot.lane.b32.xlu0 %v620_v56, %s1033_s12 }
  0xd8   : > { %v537_v60 = vpop.xlane.xlu0 %536 }
  0xd9   : > { %v621_v62 = vmul.f32 %v605_v58, %v537_v60  ;;  %v543_v4 = vpop.xlane.xlu1 %542 }
  0xda   : > { %v623_v11 = vmul.f32 %v607_v2, %v543_v4 }
  0xdb   : > { %647 = vrot.lane.b32.xlu1 %v621_v62, %s1033_s12 }
  0xdc   : > { %v546_v7 = vpop.xlane.xlu0 %545 }
  0xdd   : > { %v624_v9 = vmul.f32 %v608_v1, %v546_v7  ;;  %v549_v21 = vpop.xlane.xlu1 %548 }
  0xde   : > { %v625_v22 = vmul.f32 %v609_v17, %v549_v21 }
  0xdf   : > { %649 = vrot.lane.b32.xlu1 %v622_v63, %s1033_s12  ;;  %653 = vrot.lane.b32.xlu0 %v624_v9, %s1033_s12 }
  0xe0   : > { %v552_v16 = vpop.xlane.xlu0 %551 }
  0xe1   : > { %v626_v19 = vmul.f32 %v610_v14, %v552_v16  ;;  %v555_v28 = vpop.xlane.xlu1 %554 }
  0xe2   : > { %v627_v0 = vmul.f32 %v611_v23, %v555_v28 }
  0xe3   : > { %651 = vrot.lane.b32.xlu1 %v623_v11, %s1033_s12  ;;  %657 = vrot.lane.b32.xlu0 %v626_v19, %s1033_s12 }
  0xe4   : > { %v502_v26 = vpop.xlane.xlu0 %501 }
  0xe5   : > { %v612_v27 = vmul.f32 %v604_v54, %v502_v26  ;;  %v505_v6 = vpop.xlane.xlu1 %504 }
  0xe6   : > { %v613_v24 = vmul.f32 %v605_v58, %v505_v6 }
  0xe7   : > { %655 = vrot.lane.b32.xlu1 %v625_v22, %s1033_s12  ;;  %629 = vst.msk [vmem:[%s1370_s15] sm:$0xff] %vm628_vm0, %v612_v27 }
  0xe8   : > { %v508_v3 = vpop.xlane.xlu0 %507  ;;  %630 = vst.msk [vmem:[%s1370_s15 + $0x8] sm:$0xff] %vm628_vm0, %v613_v24 }
  0xe9   : > { %v614_v30 = vmul.f32 %v606_v61, %v508_v3  ;;  %v511_v35 = vpop.xlane.xlu1 %510 }
  0xea   : > { %v615_v10 = vmul.f32 %v607_v2, %v511_v35 }
  0xeb   : > { %659 = vrot.lane.b32.xlu1 %v627_v0, %s1033_s12  ;;  %631 = vst.msk [vmem:[%s1370_s15 + $0x10] sm:$0xff] %vm628_vm0, %v614_v30 }
  0xec   : > { %v514_v31 = vpop.xlane.xlu0 %513  ;;  %632 = vst.msk [vmem:[%s1370_s15 + $0x18] sm:$0xff] %vm628_vm0, %v615_v10 }
  0xed   : > { %v616_v33 = vmul.f32 %v608_v1, %v514_v31  ;;  %v517_v12 = vpop.xlane.xlu1 %516 }
  0xee   : > { %v617_v29 = vmul.f32 %v609_v17, %v517_v12 }
  0xef   : > { %633 = vst.msk [vmem:[%s1370_s15 + $0x20] sm:$0xff] %vm628_vm0, %v616_v33 }
  0xf0   : > { %v520_v36 = vpop.xlane.xlu0 %519  ;;  %634 = vst.msk [vmem:[%s1370_s15 + $0x28] sm:$0xff] %vm628_vm0, %v617_v29 }
  0xf1   : > { %v618_v37 = vmul.f32 %v610_v14, %v520_v36  ;;  %v523_v15 = vpop.xlane.xlu1 %522 }
  0xf2   : > { %v619_v32 = vmul.f32 %v611_v23, %v523_v15 }
  0xf3   : > { %635 = vst.msk [vmem:[%s1370_s15 + $0x30] sm:$0xff] %vm628_vm0, %v618_v37 }
  0xf4   : > { %636 = vst.msk [vmem:[%s1370_s15 + $0x38] sm:$0xff] %vm628_vm0, %v619_v32  ;;  %v570_v38 = vpop.xlane.xlu0 %569 }
  0xf5   : > { %v573_v39 = vpop.xlane.xlu1 %572 }
  0xf8   : > { %v576_v40 = vpop.xlane.xlu0 %575 }
  0xf9   : > { %v579_v44 = vpop.xlane.xlu1 %578 }
  0xfc   : > { %v582_v41 = vpop.xlane.xlu0 %581 }
  0xfd   : > { %v585_v25 = vpop.xlane.xlu1 %584 }
 0x100   : > { %v588_v42 = vpop.xlane.xlu0 %587 }
 0x101   : > { %v591_v52 = vpop.xlane.xlu1 %590 }
 0x104   : > { %v594_v43 = vpop.xlane.xlu0 %593 }
 0x105   : > { %v597_v45 = vpop.xlane.xlu1 %596 }
 0x108   : > { %v600_v46 = vpop.xlane.xlu0 %599 }
 0x109   : > { %v603_v5 = vpop.xlane.xlu1 %602 }
 0x149   : > { %v646_v57 = vpop.permute.xlu0 %645 }
 0x14a   : > { %670 = vst.msk [vmem:[%s1370_s15] sm:$0xff] %vm669_vm2, %v646_v57 }
 0x14b   : > { %679 = vst.msk [vmem:[%s1370_s15] sm:$0xff] %vm678_vm3, %v1347_v53 }
 0x14c   : > { %688 = vst.msk [vmem:[%s1370_s15] sm:$0xff] %vm687_vm4, %v582_v41 }
 0x14d   : > { %v648_v47 = vpop.permute.xlu1 %647 }
 0x14e   : > { %671 = vst.msk [vmem:[%s1370_s15 + $0x8] sm:$0xff] %vm669_vm2, %v648_v47 }
 0x14f   : > { %680 = vst.msk [vmem:[%s1370_s15 + $0x8] sm:$0xff] %vm678_vm3, %v1349_v51 }
 0x150   : > { %689 = vst.msk [vmem:[%s1370_s15 + $0x8] sm:$0xff] %vm687_vm4, %v585_v25 }
 0x151   : > { %v650_v48 = vpop.permute.xlu1 %649  ;;  %v654_v49 = vpop.permute.xlu0 %653 }
 0x152   : > { %672 = vst.msk [vmem:[%s1370_s15 + $0x10] sm:$0xff] %vm669_vm2, %v650_v48  ;;  %674 = vst.msk [vmem:[%s1370_s15 + $0x20] sm:$0xff] %vm669_vm2, %v654_v49 }
 0x153   : > { %681 = vst.msk [vmem:[%s1370_s15 + $0x10] sm:$0xff] %vm678_vm3, %v1351_v13  ;;  %683 = vst.msk [vmem:[%s1370_s15 + $0x20] sm:$0xff] %vm678_vm3, %v570_v38 }
 0x154   : > { %690 = vst.msk [vmem:[%s1370_s15 + $0x10] sm:$0xff] %vm687_vm4, %v588_v42  ;;  %692 = vst.msk [vmem:[%s1370_s15 + $0x20] sm:$0xff] %vm687_vm4, %v594_v43 }
 0x155   : > { %v652_v18 = vpop.permute.xlu1 %651  ;;  %v658_v50 = vpop.permute.xlu0 %657 }
 0x156   : > { %673 = vst.msk [vmem:[%s1370_s15 + $0x18] sm:$0xff] %vm669_vm2, %v652_v18  ;;  %676 = vst.msk [vmem:[%s1370_s15 + $0x30] sm:$0xff] %vm669_vm2, %v658_v50 }
 0x157   : > { %682 = vst.msk [vmem:[%s1370_s15 + $0x18] sm:$0xff] %vm678_vm3, %v1357_v8  ;;  %685 = vst.msk [vmem:[%s1370_s15 + $0x30] sm:$0xff] %vm678_vm3, %v576_v40 }
 0x158   : > { %691 = vst.msk [vmem:[%s1370_s15 + $0x18] sm:$0xff] %vm687_vm4, %v591_v52  ;;  %694 = vst.msk [vmem:[%s1370_s15 + $0x30] sm:$0xff] %vm687_vm4, %v600_v46 }
 0x159   : > { %v656_v20 = vpop.permute.xlu1 %655 }
 0x15a   : > { %675 = vst.msk [vmem:[%s1370_s15 + $0x28] sm:$0xff] %vm669_vm2, %v656_v20 }
 0x15b   : > { %684 = vst.msk [vmem:[%s1370_s15 + $0x28] sm:$0xff] %vm678_vm3, %v573_v39 }
 0x15c   : > { %693 = vst.msk [vmem:[%s1370_s15 + $0x28] sm:$0xff] %vm687_vm4, %v597_v45 }
 0x15d   : > { %v660_v34 = vpop.permute.xlu1 %659 }
 0x15e   : > { %677 = vst.msk [vmem:[%s1370_s15 + $0x38] sm:$0xff] %vm669_vm2, %v660_v34 }
 0x15f   : > { %686 = vst.msk [vmem:[%s1370_s15 + $0x38] sm:$0xff] %vm678_vm3, %v579_v44 }
 0x160   : > { %695 = vst.msk [vmem:[%s1370_s15 + $0x38] sm:$0xff] %vm687_vm4, %v603_v5 }
 0x161 PF: > { %s17_s20 = sadd.s32 1, %s1027_s20   ;;  %s1467_s15 = smov %s1011_s16 }
 0x162   : > { %p14_p7 = scmp.ge.s32.totalorder %s17_s20, 4   ;;  %s1468_s16 = smov %s1015_s17 }
 0x163   : > { %s1469_s17 = smov %s1108_s27  ;;  %s1470_s18 = smov %s1023_s19 }
 0x164   : > { %s1471_s19 = smov %s1473_s22  ;;  %16 = sbr.rel (!%p14_p7) target bundleno = 4 (0x4), region = 85 }
 0x169   :  { %726 = vsyncpa [#allocation3], 1 }
 0x16a   :  { %728 = vsyncpa [#allocation3 + $0x1], 1 }

// kernel: loftr_loss_forward.3
= control target key start
LH: loop header
LB: loop body
LE: loop exit
PB: predicated region body
PF: predicated region fallthrough
CT: control target
= control target key end

     0   :  { %s181_s0 = inlined_call_operand.vmem [shape: f32[3,64], index: 0, kind: input, shape index: {}]   ;;  %s182_s1 = inlined_call_operand.vmem [shape: f32[2,64], index: 1, kind: input, shape index: {}]   ;;  %s183_s2 = inlined_call_operand.vmem [shape: f32[2], index: 2, kind: output, shape index: {}]  }
   0x1   :  { %v12_v0 = vld [vmem:[%s181_s0] sm:$0x7] }
   0x2   :  { %v13_v1 = vld [vmem:[%s182_s1] sm:$0x3]  ;;  %v14_v2 = vmax.f32 %v12_v0, 1e-10 }
   0x3   :  { %v68_v3 = vsub.f32 %v13_v1, %v12_v0 }
   0x4   :  { %7 = vsyncpa [#allocation3], 0  ;;  %131 = vrcp.f32 %v14_v2  ;;  %v37_v4 = vand.u32 2147483647, %v13_v1  ;;  %vm20_vm1 = vcmask 516096   ;;  %v149_v9 = vmov 0.0  }
   0x5   :  { %v56_v28 = vlaneseq  ;;  %v69_v29 = vmul.f32 %v68_v3, %v68_v3  ;;  %s109_s18 = sshll.u32 %s183_s2, 4  ;;  %s110_s18 = int_to_ptr.vmem [resolvable:$true] %s109_s18 }
   0x6   :  { %v39_v5 = vrot.slane %v37_v4, 1  ;;  %s135_s20 = scalar_lea.vmem %s110_s18, 16  ;;  %p140_p2 = scmp.lt.s32.totalorder %s110_s18, %s110_s18 }
   0x7   :  { %v57_v30 = vand.u32 127, %v56_v28  ;;  %v71_v32 = vrot.slane %v69_v29, 1  ;;  %p136_p1 = scmp.ne.s32.totalorder %s110_s18, %s135_s20  ;;  %p141_p3 = scmp.lt.s32.totalorder %s135_s20, %s135_s20 }
   0x8   :  { %v41_v6 = vmax.f32 %v37_v4, %v39_v5 }
   0x9   :  { %vm58_vm2 = vcmp.eq.s32.totalorder %v57_v30, 0  ;;  %v73_v35 = vadd.f32 %v71_v32, %v69_v29  ;;  %p142_p4 = por %p141_p3, %p140_p2 }
   0xa   :  { %vm42_vm0 = vcmp.lt.f32.partialorder %v41_v6, 1.0 }
   0xb   :  { %v118_v10 = vsel %vm42_vm0, 1.0, %v149_v9  ;;  %p143_p5 = pnand %p142_p4, %p136_p1 }
   0xc   :  { %v45_v12 = vsel %vm20_vm1, %v118_v10, 0.0 }
  0x11   :  { %v132_v7 = vpop.eup %131 }
  0x12   :  { %v18_v8 = vrot.slane %v132_v7, 2 }
  0x14   :  { %v21_v11 = vsel %vm20_vm1, %v18_v8, 0.0 }
  0x15   :  { %22 = vadd.xlane.f32.xlu0 %v21_v11 }
  0x19   :  { %46 = vadd.xlane.f32.xlu0 %v45_v12 }
  0x9e   :  { %v23_v13 = vpop.xlane.xlu0 %22 }
  0x9f   :  { %v24_v14 = vrot.slane %v23_v13, 4 }
  0xa1   :  { %v25_v15 = vadd.f32 %v24_v14, %v23_v13 }
  0xa2   :  { %v47_v16 = vpop.xlane.xlu0 %46 }
  0xa3   :  { %v26_v17 = vrot.slane %v25_v15, 2  ;;  %v48_v18 = vrot.slane %v47_v16, 4 }
  0xa5   :  { %v49_v19 = vadd.f32 %v48_v18, %v47_v16  ;;  %v27_v20 = vadd.f32 %v26_v17, %v25_v15 }
  0xa7   :  { %v50_v21 = vrot.slane %v49_v19, 2  ;;  %v28_v22 = vrot.slane %v27_v20, 1 }
  0xa9   :  { %v51_v23 = vadd.f32 %v50_v21, %v49_v19  ;;  %v29_v24 = vadd.f32 %v28_v22, %v27_v20 }
  0xab   :  { %121 = vpush %v29_v24  ;;  %v52_v25 = vrot.slane %v51_v23, 1 }
  0xad   :  { %v53_v26 = vadd.f32 %v52_v25, %v51_v23 }
  0xaf   :  { %123 = vpush %v53_v26 }
  0xdc   :  { %s122_s0 = spop %121 }
  0xdd   :  { %s33_s1 = smul.f32 0.015625, %s122_s0 }
  0xdf   :  { %v34_v27 = vstv %s33_s1 }
  0xe0   :  { %133 = vrcp.f32 %v34_v27  ;;  %s124_s13 = spop %123 }
  0xe1   :  { %p55_p0 = scmp.gt.f32.partialorder %s124_s13, 0.0 }
  0xe3   :  { %s119_s14 = scalar_select %p55_p0, 0, 1 }
  0xe5   :  { %v61_v31 = vstv %s119_s14 }
  0xe6   :  { %vm62_vm3 = vcmp.eq.s32.totalorder %v61_v31, 1 }
  0xe7   :  { %vm63_vm4 = vmand %vm62_vm3, %vm58_vm2 }
  0xe8   :  { %vm64_vm5 = vmor %vm42_vm0, %vm63_vm4 }
  0xe9   :  { %v120_v39 = vsel %vm64_vm5, 1.0, %v149_v9 }
  0xea   :  { %v91_v42 = vsel %vm20_vm1, %v120_v39, 0.0 }
  0xed   :  { %v134_v33 = vpop.eup %133 }
  0xee   :  { %v36_v34 = vmul.f32 %v134_v33, %v132_v7 }
  0xf0   :  { %v65_v36 = vsel %vm63_vm4, 0.0, %v36_v34 }
  0xf1   :  { %v75_v37 = vrot.slane %v65_v36, 2 }
  0xf3   :  { %v77_v38 = vmul.f32 %v75_v37, %v73_v35 }
  0xf5   :  { %v78_v40 = vmul.f32 %v120_v39, %v77_v38 }
  0xf7   :  { %v79_v41 = vsel %vm20_vm1, %v78_v40, 0.0 }
  0xf8   :  { %80 = vadd.xlane.f32.xlu1 %v79_v41 }
  0xfc   :  { %92 = vadd.xlane.f32.xlu1 %v91_v42 }
 0x181   :  { %v81_v43 = vpop.xlane.xlu1 %80 }
 0x182   :  { %v82_v44 = vrot.slane %v81_v43, 4 }
 0x184   :  { %v83_v45 = vadd.f32 %v82_v44, %v81_v43 }
 0x185   :  { %v93_v46 = vpop.xlane.xlu1 %92 }
 0x186   :  { %v84_v47 = vrot.slane %v83_v45, 2  ;;  %v94_v48 = vrot.slane %v93_v46, 4 }
 0x188   :  { %v95_v49 = vadd.f32 %v94_v48, %v93_v46  ;;  %v85_v50 = vadd.f32 %v84_v47, %v83_v45 }
 0x18a   :  { %v96_v51 = vrot.slane %v95_v49, 2  ;;  %v86_v52 = vrot.slane %v85_v50, 1 }
 0x18c   :  { %v97_v53 = vadd.f32 %v96_v51, %v95_v49  ;;  %v87_v54 = vadd.f32 %v86_v52, %v85_v50 }
 0x18e   :  { %125 = vpush %v87_v54  ;;  %v98_v55 = vrot.slane %v97_v53, 1 }
 0x190   :  { %v99_v56 = vadd.f32 %v98_v55, %v97_v53 }
 0x192   :  { %127 = vpush %v99_v56 }
 0x1bf   :  { %s126_s15 = spop %125 }
 0x1c0   :  { %90 = sst [smem:[#allocation2]] %s126_s15 }
 0x1c3   :  { %s128_s19 = spop %127 }
 0x1c4   :  { %102 = sst [smem:[#allocation2 + $0x1]] %s128_s19 }
 0x1c5   :  { %146 = shalt.err (!%p143_p5)
}
 0x1c6   :  { %s150_s21 = smov [#allocation2]  }
 0x1c7   :  { %112 = dma.smem_to_vmem %s150_s21, 16, %s110_s18, [#allocation3]  }
 0x1c8   :  { %147 = dma.done.wait [#allocation3], 16  }
 0x1c9   :  { %148 = vsyncadd [#allocation3], 4294967280 }
 0x1ca   :  { %116 = sfence }
 0x1cb   :  { %117 = vsyncpa [#allocation3], 1 }

</bundles_post_ra>
